<compile_context>
chip_gen: v6e
topology: v6e:2x2x1
jax: 0.10.0
libtpu: 0.0.40
codegen_flags: <defaults>
</compile_context>

<pallas_src>
import functools

import jax
import jax.numpy as jnp
from jax.experimental import pallas as pl
from jax.experimental.pallas import tpu as pltpu

_TM = 256          # output-row tile (nodes per grid row step)
_TK = 512          # reduction tile over source nodes
assert _TK % _TM == 0
_VMEM_LIMIT = 64 * 1024 * 1024   # explicit scoped-VMEM limit (fits all gens)


# --------------------------------------------------------------------------
# helpers
# --------------------------------------------------------------------------
def _round_up(x, m):
    return (x + m - 1) // m * m


def _node_tiling(n):
    """Pick (n_pad, tm, tk) such that tm | n_pad and tk | n_pad."""
    n_pad = _round_up(n, 128)
    if n_pad <= _TM:
        return n_pad, n_pad, n_pad
    n_pad = _round_up(n_pad, _TK)
    return n_pad, _TM, _TK


def _pad2(a, rows, cols):
    return jnp.pad(a, ((0, rows - a.shape[0]), (0, cols - a.shape[1])))


def _stack_w(w_l, w_r, cin_p, cout_p):
    """Stacked projection weight [Wl_pad; Wr_pad] -> (2*cin_p, cout_p) bf16."""
    wl = _pad2(w_l, cin_p, cout_p)
    wr = _pad2(w_r, cin_p, cout_p)
    return jnp.concatenate([wl, wr], axis=0).astype(jnp.bfloat16)


def _pad_bias(b, cout_p):
    return jnp.pad(b, (0, cout_p - b.shape[0])).reshape(1, cout_p).astype(jnp.float32)


# --------------------------------------------------------------------------
# tiled single-layer SAGEConv kernel
# --------------------------------------------------------------------------
def _sage_tiled_kernel(a_ref, xk_ref, xi_ref, deg_ref, w_ref, b_ref,
                       o_ref, acc_ref, *, relu):
    """out = ((A @ X) / deg) @ Wl + X @ Wr + b   (single matmul via stacking)."""
    k = pl.program_id(1)

    @pl.when(k == 0)
    def _():
        acc_ref[...] = jnp.zeros_like(acc_ref)

    # neighbor-sum accumulation over the K (source-node) axis, f32 accumulator
    acc_ref[...] += jnp.dot(a_ref[...], xk_ref[...],
                            preferred_element_type=jnp.float32)

    @pl.when(k == pl.num_programs(1) - 1)
    def _():
        inv_deg = pl.reciprocal(jnp.maximum(deg_ref[...], 1.0), approx=True)
        agg = (acc_ref[...] * inv_deg).astype(xi_ref.dtype)        # (tm, cin)
        feat = jnp.concatenate([agg, xi_ref[...]], axis=-1)        # (tm, 2*cin)
        out = jnp.dot(feat, w_ref[...], preferred_element_type=jnp.float32)
        out = out + b_ref[...]
        if relu:
            out = jnp.maximum(out, 0.0)
        o_ref[...] = out.astype(o_ref.dtype)


def sage_conv_tiled(a, x, deg, w_stacked, bias, *, relu, tm, tk):
    """Tiled pallas_call for one SAGEConv layer.

    a         : (N_pad, N_pad)  bf16, raw neighbor counts A[dst, src]
    x         : (N_pad, Cin_p)  bf16, zero-padded node features
    deg       : (N_pad, 1)      f32,  in-degree of each node
    w_stacked : (2*Cin_p, Cout_p) bf16, [Wl_pad; Wr_pad]
    bias      : (1, Cout_p)     f32
    """
    n_pad = a.shape[0]
    cin_p = x.shape[1]
    cout_p = w_stacked.shape[1]
    grid = (n_pad // tm, n_pad // tk)

    kernel = functools.partial(_sage_tiled_kernel, relu=relu)
    return pl.pallas_call(
        kernel,
        out_shape=jax.ShapeDtypeStruct((n_pad, cout_p), jnp.float32),
        grid_spec=pltpu.PrefetchScalarGridSpec(
            num_scalar_prefetch=0,
            grid=grid,
            in_specs=[
                pl.BlockSpec((tm, tk), lambda i, k: (i, k)),           # A tile
                pl.BlockSpec((tk, cin_p), lambda i, k: (k, 0)),        # X (K rows)
                pl.BlockSpec((tm, cin_p), lambda i, k: (i, 0)),        # X (self rows)
                pl.BlockSpec((tm, 1), lambda i, k: (i, 0)),            # deg
                pl.BlockSpec((2 * cin_p, cout_p), lambda i, k: (0, 0)),  # W stacked
                pl.BlockSpec((1, cout_p), lambda i, k: (0, 0)),        # bias
            ],
            out_specs=pl.BlockSpec((tm, cout_p), lambda i, k: (i, 0)),
            scratch_shapes=[pltpu.VMEM((tm, cin_p), jnp.float32)],
        ),
        compiler_params=pltpu.CompilerParams(
            dimension_semantics=("parallel", "arbitrary"),
            vmem_limit_bytes=_VMEM_LIMIT,
        ),
    )(a, x, x, deg, w_stacked, bias)


# --------------------------------------------------------------------------
# fused two-layer kernel (small graphs: everything fits VMEM)
# --------------------------------------------------------------------------
def _fused_gnn_kernel(a_ref, x_ref, deg_ref, w1_ref, b1_ref, w2_ref, b2_ref,
                      o_ref):
    inv_deg = pl.reciprocal(jnp.maximum(deg_ref[...], 1.0), approx=True)
    a = a_ref[...]
    x = x_ref[...]

    # ---- layer 1: relu(SAGEConv) ----
    agg1 = jnp.dot(a, x, preferred_element_type=jnp.float32) * inv_deg
    feat1 = jnp.concatenate([agg1.astype(x.dtype), x], axis=-1)
    h = jnp.dot(feat1, w1_ref[...], preferred_element_type=jnp.float32)
    h = jnp.maximum(h + b1_ref[...], 0.0)

    # dropout(p=0.2) in eval mode -> identity
    h = h.astype(jnp.bfloat16)

    # ---- layer 2: SAGEConv ----
    agg2 = jnp.dot(a, h, preferred_element_type=jnp.float32) * inv_deg
    feat2 = jnp.concatenate([agg2.astype(h.dtype), h], axis=-1)
    out = jnp.dot(feat2, w2_ref[...], preferred_element_type=jnp.float32)
    out = out + b2_ref[...]
    o_ref[...] = out.astype(o_ref.dtype)


def gnn_fused(a, x, deg, w1, b1, w2, b2):
    n_pad = a.shape[0]
    cout_p = w2.shape[1]
    vmem = pl.BlockSpec(memory_space=pltpu.MemorySpace.VMEM)
    return pl.pallas_call(
        _fused_gnn_kernel,
        out_shape=jax.ShapeDtypeStruct((n_pad, cout_p), jnp.float32),
        in_specs=[vmem] * 7,
        out_specs=vmem,
        compiler_params=pltpu.CompilerParams(vmem_limit_bytes=_VMEM_LIMIT),
    )(a, x, deg, w1, b1, w2, b2)


# --------------------------------------------------------------------------
# full forward pass
# --------------------------------------------------------------------------
def gnn_forward(params, x, edge_index, *, fuse=None):
    """Two-layer GNN forward (inference).  edge_index: (2, E) int32,
    edge_index[0]=source, edge_index[1]=target (PyG default flow)."""
    n, cin = x.shape
    hid = params["w_l1"].shape[1]
    cout = params["w_l2"].shape[1]

    n_pad, tm, tk = _node_tiling(n)
    cin_p = _round_up(cin, 128)
    hid_p = _round_up(hid, 128)
    cout_p = _round_up(cout, 128)

    # Dense (padded) adjacency with raw neighbor COUNTS + per-node degree.
    # Normalization (1/deg) is applied inside the kernels (EUP reciprocal),
    # avoiding a second O(N^2) pass over A here.  Counts are small integers,
    # so the bf16 cast is exact.
    src, dst = edge_index[0], edge_index[1]
    a = jnp.zeros((n_pad, n_pad), jnp.float32).at[dst, src].add(1.0)
    a = a.astype(jnp.bfloat16)
    deg = jnp.zeros((n_pad, 1), jnp.float32).at[dst, 0].add(1.0)

    x_p = _pad2(x, n_pad, cin_p).astype(jnp.bfloat16)

    w1 = _stack_w(params["w_l1"], params["w_r1"], cin_p, hid_p)
    b1 = _pad_bias(params["b1"], hid_p)
    w2 = _stack_w(params["w_l2"], params["w_r2"], hid_p, cout_p)
    b2 = _pad_bias(params["b2"], cout_p)

    if fuse is None:
        fuse = n_pad <= 1024   # A + X + H + weights comfortably fit VMEM

    if fuse:
        out_p = gnn_fused(a, x_p, deg, w1, b1, w2, b2)
    else:
        h_p = sage_conv_tiled(a, x_p, deg, w1, b1, relu=True, tm=tm, tk=tk)
        # dropout p=0.2, eval mode -> identity
        out_p = sage_conv_tiled(a, h_p.astype(jnp.bfloat16), deg, w2, b2,
                                relu=False, tm=tm, tk=tk)
    return out_p[:n, :cout]


def gnn_reference(params, x, edge_index):
    """Pure-JAX f32 reference of the PyTorch forward (eval mode)."""
    n = x.shape[0]
    src, dst = edge_index[0], edge_index[1]
    a = jnp.zeros((n, n), jnp.float32).at[dst, src].add(1.0)
    a = a / jnp.maximum(a.sum(axis=1, keepdims=True), 1.0)
    h = a @ x @ params["w_l1"] + x @ params["w_r1"] + params["b1"]
    h = jnp.maximum(h, 0.0)
    return a @ h @ params["w_l2"] + h @ params["w_r2"] + params["b2"]


def init_params(key, in_channels, hidden_channels, out_channels):
    ks = jax.random.split(key, 6)
    s1 = 1.0 / jnp.sqrt(in_channels)
    s2 = 1.0 / jnp.sqrt(hidden_channels)
    return {
        "w_l1": jax.random.uniform(ks[0], (in_channels, hidden_channels),
                                   jnp.float32, -s1, s1),
        "w_r1": jax.random.uniform(ks[1], (in_channels, hidden_channels),
                                   jnp.float32, -s1, s1),
        "b1":   jax.random.uniform(ks[2], (hidden_channels,),
                                   jnp.float32, -s1, s1),
        "w_l2": jax.random.uniform(ks[3], (hidden_channels, out_channels),
                                   jnp.float32, -s2, s2),
        "w_r2": jax.random.uniform(ks[4], (hidden_channels, out_channels),
                                   jnp.float32, -s2, s2),
        "b2":   jax.random.uniform(ks[5], (out_channels,),
                                   jnp.float32, -s2, s2),
    }


if __name__ == "__main__":
    # Small deterministic problem: 16 nodes, 8 input features,
    # hidden=32, out=16, 48 directed edges.
    num_nodes = 16
    in_channels, hidden_channels, out_channels = 8, 32, 16
    num_edges = 48

    key = jax.random.PRNGKey(0)
    k_x, k_e1, k_e2, k_p = jax.random.split(key, 4)

    x = jax.random.normal(k_x, (num_nodes, in_channels), jnp.float32)
    src = jax.random.randint(k_e1, (num_edges,), 0, num_nodes, jnp.int32)
    dst = jax.random.randint(k_e2, (num_edges,), 0, num_nodes, jnp.int32)
    edge_index = jnp.stack([src, dst], axis=0)   # (2, E)

    params = init_params(k_p, in_channels, hidden_channels, out_channels)

    # Exercise both paths: the general tiled/gridded path and the fused
    # single-call path, then cross-check against the f32 reference.
    out_tiled = jax.block_until_ready(
        gnn_forward(params, x, edge_index, fuse=False))
    out_fused = jax.block_until_ready(
        gnn_forward(params, x, edge_index, fuse=True))
    ref = gnn_reference(params, x, edge_index)

    assert out_tiled.shape == (num_nodes, out_channels)
    assert out_fused.shape == (num_nodes, out_channels)
    assert bool(jnp.all(jnp.isfinite(out_tiled)))
    assert bool(jnp.all(jnp.isfinite(out_fused)))
    assert bool(jnp.allclose(out_tiled, out_fused, atol=1e-2, rtol=1e-2))
    assert bool(jnp.allclose(out_tiled, ref, atol=5e-2, rtol=5e-2))
    assert bool(jnp.allclose(out_fused, ref, atol=5e-2, rtol=5e-2))
    print("KERNEL_OK")
</pallas_src>

<mosaic_0001>
module attributes {stable_mosaic.version = 11 : i64} {
  func.func @_sage_tiled_kernel(%arg0: i32, %arg1: i32, %arg2: memref<128x128xbf16, #tpu.memory_space<vmem>>, %arg3: memref<128x128xbf16, #tpu.memory_space<vmem>>, %arg4: memref<128x128xbf16, #tpu.memory_space<vmem>>, %arg5: memref<128x1xf32, #tpu.memory_space<vmem>>, %arg6: memref<256x128xbf16, #tpu.memory_space<vmem>>, %arg7: memref<1x128xf32, #tpu.memory_space<vmem>>, %arg8: memref<128x128xf32, #tpu.memory_space<vmem>>, %arg9: memref<128x128xf32, #tpu.memory_space<vmem>>) attributes {dimension_semantics = [#tpu.dimension_semantics<parallel>, #tpu.dimension_semantics<arbitrary>], iteration_bounds = array<i64: 1, 1>, scalar_prefetch = 0 : i64, scratch_operands = 1 : i64, tpu.core_type = #tpu.core_type<tc>, window_params = [{transform_indices = @transform_0, window_bounds = array<i64: 128, 128>}, {transform_indices = @transform_1, window_bounds = array<i64: 128, 128>}, {transform_indices = @transform_2, window_bounds = array<i64: 128, 128>}, {transform_indices = @transform_3, window_bounds = array<i64: 128, 1>}, {pipeline_mode = #tpu.pipeline_mode<synchronous>, transform_indices = @transform_4, window_bounds = array<i64: 256, 128>}, {pipeline_mode = #tpu.pipeline_mode<synchronous>, transform_indices = @transform_5, window_bounds = array<i64: 1, 128>}, {transform_indices = @transform_6, window_bounds = array<i64: 128, 128>}]} {
    %c0_i32 = arith.constant 0 : i32
    %0 = arith.cmpi eq, %arg1, %c0_i32 : i32
    %1 = arith.extui %0 : i1 to i32
    %c0_i32_0 = arith.constant 0 : i32
    %2 = arith.cmpi ne, %1, %c0_i32_0 : i32
    scf.if %2 {
      %cst_10 = arith.constant 0.000000e+00 : f32
      %12 = vector.broadcast %cst_10 : f32 to vector<128x128xf32>
      %c0_11 = arith.constant 0 : index
      %c0_12 = arith.constant 0 : index
      %13 = vector.load %arg9[%c0_11, %c0_12] : memref<128x128xf32, #tpu.memory_space<vmem>>, vector<128x128xf32>
      tpu.vector_store %arg9[%c0_11, %c0_12], %12 {strides = array<i32>} : memref<128x128xf32, #tpu.memory_space<vmem>>, vector<128x128xf32>,
    } else {
    }
    %c0 = arith.constant 0 : index
    %c0_1 = arith.constant 0 : index
    %3 = vector.load %arg9[%c0, %c0_1] : memref<128x128xf32, #tpu.memory_space<vmem>>, vector<128x128xf32>
    %c0_2 = arith.constant 0 : index
    %c0_3 = arith.constant 0 : index
    %4 = vector.load %arg2[%c0_2, %c0_3] : memref<128x128xbf16, #tpu.memory_space<vmem>>, vector<128x128xbf16>
    %c0_4 = arith.constant 0 : index
    %c0_5 = arith.constant 0 : index
    %5 = vector.load %arg3[%c0_4, %c0_5] : memref<128x128xbf16, #tpu.memory_space<vmem>>, vector<128x128xbf16>
    %cst = arith.constant dense<0.000000e+00> : vector<128x128xf32>
    %6 = tpu.matmul %4, %5, %cst {dimension_numbers = #tpu.dot_dimension_numbers<[1], [0], [0], [1], [0, 0, 1, 1], [], []>} : vector<128x128xbf16>, vector<128x128xbf16>, vector<128x128xf32> -> vector<128x128xf32>
    %7 = arith.addf %3, %6 : vector<128x128xf32>
    %c0_6 = arith.constant 0 : index
    %c0_7 = arith.constant 0 : index
    %8 = vector.load %arg9[%c0_6, %c0_7] : memref<128x128xf32, #tpu.memory_space<vmem>>, vector<128x128xf32>
    tpu.vector_store %arg9[%c0_6, %c0_7], %7 {strides = array<i32>} : memref<128x128xf32, #tpu.memory_space<vmem>>, vector<128x128xf32>,
    %c0_i32_8 = arith.constant 0 : i32
    %9 = arith.cmpi eq, %arg1, %c0_i32_8 : i32
    %10 = arith.extui %9 : i1 to i32
    %c0_i32_9 = arith.constant 0 : i32
    %11 = arith.cmpi ne, %10, %c0_i32_9 : i32
    scf.if %11 {
      %c0_10 = arith.constant 0 : index
      %c0_11 = arith.constant 0 : index
      %12 = vector.load %arg5[%c0_10, %c0_11] : memref<128x1xf32, #tpu.memory_space<vmem>>, vector<128x1xf32>
      %cst_12 = arith.constant 1.000000e+00 : f32
      %13 = vector.broadcast %cst_12 : f32 to vector<128x1xf32>
      %14 = arith.maximumf %12, %13 : vector<128x1xf32>
      %15 = tpu.reciprocal %14 {approx = true} : vector<128x1xf32> -> vector<128x1xf32>
      %c0_13 = arith.constant 0 : index
      %c0_14 = arith.constant 0 : index
      %16 = vector.load %arg9[%c0_13, %c0_14] : memref<128x128xf32, #tpu.memory_space<vmem>>, vector<128x128xf32>
      %17 = vector.broadcast %15 : vector<128x1xf32> to vector<128x128xf32>
      %18 = arith.mulf %16, %17 : vector<128x128xf32>
      %19 = arith.truncf %18 : vector<128x128xf32> to vector<128x128xbf16>
      %c0_15 = arith.constant 0 : index
      %c0_16 = arith.constant 0 : index
      %20 = vector.load %arg4[%c0_15, %c0_16] : memref<128x128xbf16, #tpu.memory_space<vmem>>, vector<128x128xbf16>
      %21 = tpu.concatenate %19, %20 in 1 : vector<128x128xbf16>, vector<128x128xbf16> -> vector<128x256xbf16>
      %c0_17 = arith.constant 0 : index
      %c0_18 = arith.constant 0 : index
      %22 = vector.load %arg6[%c0_17, %c0_18] : memref<256x128xbf16, #tpu.memory_space<vmem>>, vector<256x128xbf16>
      %cst_19 = arith.constant dense<0.000000e+00> : vector<128x128xf32>
      %23 = tpu.matmul %21, %22, %cst_19 {dimension_numbers = #tpu.dot_dimension_numbers<[1], [0], [0], [1], [0, 0, 1, 1], [], []>} : vector<128x256xbf16>, vector<256x128xbf16>, vector<128x128xf32> -> vector<128x128xf32>
      %c0_20 = arith.constant 0 : index
      %c0_21 = arith.constant 0 : index
      %24 = vector.load %arg7[%c0_20, %c0_21] : memref<1x128xf32, #tpu.memory_space<vmem>>, vector<1x128xf32>
      %25 = vector.broadcast %24 : vector<1x128xf32> to vector<128x128xf32>
      %26 = arith.addf %23, %25 : vector<128x128xf32>
      %cst_22 = arith.constant 0.000000e+00 : f32
      %27 = vector.broadcast %cst_22 : f32 to vector<128x128xf32>
      %28 = arith.maximumf %26, %27 : vector<128x128xf32>
      %c0_23 = arith.constant 0 : index
      %c0_24 = arith.constant 0 : index
      %29 = vector.load %arg8[%c0_23, %c0_24] : memref<128x128xf32, #tpu.memory_space<vmem>>, vector<128x128xf32>
      tpu.vector_store %arg8[%c0_23, %c0_24], %28 {strides = array<i32>} : memref<128x128xf32, #tpu.memory_space<vmem>>, vector<128x128xf32>,
    } else {
    }
    return
  }
  func.func @transform_0(%arg0: i32, %arg1: i32) -> (i32, i32) {
    %c0_i32 = arith.constant 0 : i32
    return %arg0, %arg1 : i32, i32
  }
  func.func @transform_1(%arg0: i32, %arg1: i32) -> (i32, i32) {
    %c0_i32 = arith.constant 0 : i32
    %c0_i32_0 = arith.constant 0 : i32
    return %arg1, %c0_i32 : i32, i32
  }
  func.func @transform_2(%arg0: i32, %arg1: i32) -> (i32, i32) {
    %c0_i32 = arith.constant 0 : i32
    %c0_i32_0 = arith.constant 0 : i32
    return %arg0, %c0_i32 : i32, i32
  }
  func.func @transform_3(%arg0: i32, %arg1: i32) -> (i32, i32) {
    %c0_i32 = arith.constant 0 : i32
    %c0_i32_0 = arith.constant 0 : i32
    return %arg0, %c0_i32 : i32, i32
  }
  func.func @transform_4(%arg0: i32, %arg1: i32) -> (i32, i32) {
    %c0_i32 = arith.constant 0 : i32
    %c0_i32_0 = arith.constant 0 : i32
    %c0_i32_1 = arith.constant 0 : i32
    return %c0_i32, %c0_i32_0 : i32, i32
  }
  func.func @transform_5(%arg0: i32, %arg1: i32) -> (i32, i32) {
    %c0_i32 = arith.constant 0 : i32
    %c0_i32_0 = arith.constant 0 : i32
    %c0_i32_1 = arith.constant 0 : i32
    return %c0_i32, %c0_i32_0 : i32, i32
  }
  func.func @transform_6(%arg0: i32, %arg1: i32) -> (i32, i32) {
    %c0_i32 = arith.constant 0 : i32
    %c0_i32_0 = arith.constant 0 : i32
    return %arg0, %c0_i32 : i32, i32
  }
}

</mosaic_0001>

<bundles_post_ra>
// kernel: tpu_custom_call.1
= control target key start
LH: loop header
LB: loop body
LE: loop exit
PB: predicated region body
PF: predicated region fallthrough
CT: control target
= control target key end

     0   :  { %11 = vsyncpa [#allocation4], 0  ;;  %s1387_s0 = inlined_call_operand.hbm [shape: bf16[128,128], index: 0, kind: input, shape index: {}]   ;;  %s1388_s1 = inlined_call_operand.hbm [shape: bf16[128,128], index: 1, kind: input, shape index: {}]   ;;  %s1389_s2 = inlined_call_operand.hbm [shape: bf16[128,128], index: 2, kind: input, shape index: {}]   ;;  %s1390_s3 = inlined_call_operand.vmem [shape: f32[128,1], index: 3, kind: input, shape index: {}]   ;;  %s1391_s4 = inlined_call_operand.vmem [shape: bf16[256,128], index: 4, kind: input, shape index: {}]   ;;  %s1392_s5 = inlined_call_operand.vmem [shape: f32[1,128], index: 5, kind: input, shape index: {}]   ;;  %s1393_s6 = inlined_call_operand.hbm [shape: f32[128,128], index: 6, kind: output, shape index: {}]  }
   0x1   :  { %12 = vsyncpa [#allocation7], 0 }
   0x2   :  { %13 = vsyncpa [#allocation5], 0  ;;  %s1214_s21 = smov [#allocation6]   ;;  %s1215_s23 = smov [#allocation3]  }
   0x3   :  { %s31_s22 = sshll.u32 %s1214_s21, 4  ;;  %s19_s24 = sshll.u32 %s1215_s23, 4  ;;  %s32_s22 = int_to_ptr.vmem [resolvable:$true] %s31_s22  ;;  %s20_s24 = int_to_ptr.vmem [resolvable:$true] %s19_s24 }
   0x4   :  { %s1136_s25 = scalar_lea.vmem %s32_s22, 1024  ;;  %p1141_p1 = scmp.lt.s32.totalorder %s32_s22, %s32_s22 }
   0x5   :  { %p1137_p0 = scmp.ne.s32.totalorder %s32_s22, %s1136_s25  ;;  %p1142_p2 = scmp.lt.s32.totalorder %s1136_s25, %s1136_s25 }
   0x7   :  { %p1143_p3 = por %p1142_p2, %p1141_p1 }
   0x9   :  { %p1144_p4 = pnand %p1143_p3, %p1137_p0 }
   0xb   :  { %1147 = shalt.err (!%p1144_p4)
}
   0xc   :  { %s1216_s26 = smov 64   ;;  %s1217_s27 = smov 4  }
   0xd   :  { %37 = dma.hbm_to_vmem [thread:$0]  %s1388_s1, 1024, %s32_s22, [#allocation7], %s1216_s26, %s1216_s26, %s1217_s27  }
   0xe   :  { %s1156_s30 = scalar_lea.vmem %s20_s24, 1024  ;;  %p1161_p6 = scmp.lt.s32.totalorder %s20_s24, %s20_s24 }
   0xf   :  { %p1157_p5 = scmp.ne.s32.totalorder %s20_s24, %s1156_s30  ;;  %p1162_p7 = scmp.lt.s32.totalorder %s1156_s30, %s1156_s30 }
  0x11   :  { %p1163_p8 = por %p1162_p7, %p1161_p6 }
  0x13   :  { %p1164_p9 = pnand %p1163_p8, %p1157_p5 }
  0x15   :  { %1167 = shalt.err (!%p1164_p9)
}
  0x16   :  { %25 = dma.hbm_to_vmem [thread:$0]  %s1387_s0, 1024, %s20_s24, [#allocation4], %s1216_s26, %s1216_s26, %s1217_s27  }
  0x17   :  { %s1218_s9 = smov [#allocation8]  }
  0x18   :  { %s43_s10 = sshll.u32 %s1218_s9, 4  ;;  %s44_s10 = int_to_ptr.vmem [resolvable:$true] %s43_s10 }
  0x19   :  { %s1176_s11 = scalar_lea.vmem %s44_s10, 1024  ;;  %p1181_p11 = scmp.lt.s32.totalorder %s44_s10, %s44_s10 }
  0x1a   :  { %p1177_p10 = scmp.ne.s32.totalorder %s44_s10, %s1176_s11  ;;  %p1182_p12 = scmp.lt.s32.totalorder %s1176_s11, %s1176_s11 }
  0x1c   :  { %p1183_p13 = por %p1182_p12, %p1181_p11 }
  0x1e   :  { %p1184_p0 = pnand %p1183_p13, %p1177_p10 }
  0x20   :  { %1187 = shalt.err (!%p1184_p0)
}
  0x21   :  { %49 = dma.hbm_to_vmem [thread:$0]  %s1389_s2, 1024, %s44_s10, [#allocation7], %s1216_s26, %s1216_s26, %s1217_s27  }
  0x22   :  { %1208 = dma.done.wait [#allocation4], 1024  }
  0x23   :  { %1209 = vsyncadd [#allocation4], 4294966272 }
  0x24   :  { %1210 = dma.done.wait [#allocation7], 2048  }
  0x25   :  { %1211 = vsyncadd [#allocation7], 4294965248  ;;  %v1219_v0 = vmov 0   ;;  %v1056_v1 = vld [vmem:[#allocation6 + $0x38] sm:$0xff]   ;;  %v1057_v2 = vld [vmem:[#allocation6 + $0x30] sm:$0xff]  }
  0x26   :  { %1054 = vset.pattern.permute.xlu0 %v1219_v0  ;;  %1055 = vset.pattern.permute.xlu1 %v1219_v0  ;;  %v1058_v3 = vld [vmem:[#allocation6 + $0x28] sm:$0xff]   ;;  %v1059_v4 = vld [vmem:[#allocation6 + $0x20] sm:$0xff]   ;;  %v1060_v6 = vld [vmem:[#allocation6 + $0x18] sm:$0xff]  }
  0x27   :  { %997 = vmatprep.subr.bf16.mxu0 %v1056_v1  ;;  %v1064_v5 = vld [vmem:[#allocation3] sm:$0xff]   ;;  %v1061_v7 = vld [vmem:[#allocation6 + $0x10] sm:$0xff]   ;;  %v367_v10 = vld [vmem:[%s1390_s3 + $0x28] sm:$0xff] }
  0x28   :  { %998 = vmatpush3.bf16.msra.mxu0 %v1056_v1  ;;  %1013 = vmatprep.mubr.bf16.mxu0 %v1064_v5  ;;  %v366_v8 = vld [vmem:[%s1390_s3 + $0x20] sm:$0xff]  ;;  %v368_v9 = vld [vmem:[%s1390_s3 + $0x30] sm:$0xff]  ;;  %v383_v13 = vmax.f32 %v367_v10, 1.0  ;;  %v369_v14 = vld [vmem:[%s1390_s3 + $0x38] sm:$0xff] }
  0x29   :  { %999 = vmatprep.subr.bf16.mxu0 %v1057_v2  ;;  %v382_v11 = vmax.f32 %v366_v8, 1.0  ;;  %v384_v12 = vmax.f32 %v368_v9, 1.0  ;;  %v385_v15 = vmax.f32 %v369_v14, 1.0  ;;  %v370_v16 = vld [vmem:[%s1390_s3 + $0x40] sm:$0xff]  ;;  %v371_v17 = vld [vmem:[%s1390_s3 + $0x48] sm:$0xff]  ;;  %v372_v18 = vld [vmem:[%s1390_s3 + $0x50] sm:$0xff] }
  0x2a   :  { %v373_v19 = vld [vmem:[%s1390_s3 + $0x58] sm:$0xff]  ;;  %v362_v20 = vld [vmem:[%s1390_s3] sm:$0xff]  ;;  %v1062_v21 = vld [vmem:[#allocation6 + $0x8] sm:$0xff]   ;;  %v386_v22 = vmax.f32 %v370_v16, 1.0  ;;  %v387_v23 = vmax.f32 %v371_v17, 1.0  ;;  %v388_v24 = vmax.f32 %v372_v18, 1.0 }
  0x2b   :  { %1096 = vrcp.f32 %v382_v11  ;;  %v1063_v25 = vld [vmem:[#allocation6] sm:$0xff]   ;;  %v389_v26 = vmax.f32 %v373_v19, 1.0  ;;  %v378_v27 = vmax.f32 %v362_v20, 1.0  ;;  %v363_v28 = vld [vmem:[%s1390_s3 + $0x8] sm:$0xff]  ;;  %v1072_v33 = vld [vmem:[%s1391_s4 + $0x78] sm:$0xff]  }
  0x2c   :  { %1000 = vmatpush3.bf16.msra.mxu0 %v1057_v2  ;;  %1098 = vrcp.f32 %v384_v12  ;;  %v374_v29 = vld [vmem:[%s1390_s3 + $0x60] sm:$0xff]  ;;  %v375_v30 = vld [vmem:[%s1390_s3 + $0x68] sm:$0xff]  ;;  %v379_v32 = vmax.f32 %v363_v28, 1.0  ;;  %v1066_v34 = vld [vmem:[#allocation3 + $0x10] sm:$0xff]   ;;  %1029 = vmatprep.subr.bf16.mxu1 %v1072_v33 }
  0x2d   :  { %1001 = vmatprep.subr.bf16.mxu0 %v1058_v3  ;;  %1100 = vrcp.f32 %v383_v13  ;;  %v1065_v31 = vld [vmem:[#allocation3 + $0x8] sm:$0xff]   ;;  %v364_v35 = vld [vmem:[%s1390_s3 + $0x10] sm:$0xff]  ;;  %v365_v36 = vld [vmem:[%s1390_s3 + $0x18] sm:$0xff]  ;;  %v390_v38 = vmax.f32 %v374_v29, 1.0  ;;  %v391_v39 = vmax.f32 %v375_v30, 1.0 }
  0x2e   :  { %1102 = vrcp.f32 %v385_v15  ;;  %v1073_v40 = vld [vmem:[%s1391_s4 + $0x38] sm:$0xff]   ;;  %v1074_v41 = vld [vmem:[%s1391_s4 + $0x70] sm:$0xff]   ;;  %v380_v46 = vmax.f32 %v364_v35, 1.0  ;;  %v381_v47 = vmax.f32 %v365_v36, 1.0  ;;  %v1076_v50 = vld [vmem:[%s1391_s4 + $0x68] sm:$0xff]  }
  0x2f   :  { %1104 = vrcp.f32 %v386_v22  ;;  %v1067_v45 = vld [vmem:[#allocation3 + $0x18] sm:$0xff]   ;;  %v376_v48 = vld [vmem:[%s1390_s3 + $0x70] sm:$0xff]  ;;  %1037 = vmatpush3.bf16.msra.mxu1 %v1073_v40  ;;  %v1068_v51 = vld [vmem:[#allocation3 + $0x20] sm:$0xff]  }
  0x30   :  { %1002 = vmatpush3.bf16.msra.mxu0 %v1058_v3  ;;  %1106 = vrcp.f32 %v387_v23  ;;  %v1075_v49 = vld [vmem:[%s1391_s4 + $0x30] sm:$0xff]   ;;  %1030 = vmatprep.subr.bf16.mxu1 %v1074_v41  ;;  %v377_v54 = vld [vmem:[%s1390_s3 + $0x78] sm:$0xff]  ;;  %v1077_v55 = vld [vmem:[%s1391_s4 + $0x28] sm:$0xff]   ;;  %v392_v57 = vmax.f32 %v376_v48, 1.0 }
  0x31   :  { %1003 = vmatprep.subr.bf16.mxu0 %v1059_v4  ;;  %1108 = vrcp.f32 %v388_v24  ;;  %v1078_v56 = vld [vmem:[%s1391_s4 + $0x60] sm:$0xff]   ;;  %v393_v59 = vmax.f32 %v377_v54, 1.0  ;;  %v1080_v62 = vld [vmem:[%s1391_s4 + $0x58] sm:$0xff]   ;;  %v1069_v0 = vld [vmem:[#allocation3 + $0x28] sm:$0xff]  }
  0x32   :  { %1110 = vrcp.f32 %v389_v26  ;;  %v1079_v61 = vld [vmem:[%s1391_s4 + $0x20] sm:$0xff]   ;;  %v1070_v2 = vld [vmem:[#allocation3 + $0x30] sm:$0xff]   ;;  %v1081_v3 = vld [vmem:[%s1391_s4 + $0x18] sm:$0xff]  }
  0x33   :  { %1112 = vrcp.f32 %v378_v27  ;;  %1038 = vmatpush3.bf16.msra.mxu1 %v1075_v49  ;;  %v1071_v8 = vld [vmem:[#allocation3 + $0x38] sm:$0xff]   ;;  %v1083_v12 = vld [vmem:[%s1391_s4 + $0x10] sm:$0xff]   ;;  %v1084_v13 = vld [vmem:[%s1391_s4 + $0x48] sm:$0xff]  }
  0x34   :  { %1004 = vmatpush3.bf16.msra.mxu0 %v1059_v4  ;;  %1114 = vrcp.f32 %v379_v32  ;;  %1031 = vmatprep.subr.bf16.mxu1 %v1076_v50  ;;  %v1082_v4 = vld [vmem:[%s1391_s4 + $0x50] sm:$0xff]   ;;  %v1085_v14 = vld [vmem:[%s1391_s4 + $0x8] sm:$0xff]   ;;  %v1086_v15 = vld [vmem:[%s1391_s4 + $0x40] sm:$0xff]  }
  0x35   :  { %1005 = vmatprep.subr.bf16.mxu0 %v1060_v6  ;;  %1116 = vrcp.f32 %v390_v38  ;;  %v1087_v16 = vld [vmem:[%s1391_s4] sm:$0xff]   ;;  %v1089_v18 = vld [vmem:[#allocation8 + $0x10] sm:$0xff]   ;;  %v1090_v38 = vld [vmem:[#allocation8 + $0x8] sm:$0xff]  }
  0x36   :  { %1118 = vrcp.f32 %v391_v39  ;;  %v1088_v17 = vld [vmem:[#allocation8] sm:$0xff]   ;;  %777 = vmatprep.mubr.bf16.mxu1 %v1089_v18 }
  0x37   :  { %1120 = vrcp.f32 %v380_v46  ;;  %1039 = vmatpush3.bf16.msra.mxu1 %v1077_v55  ;;  %v1366_v18 = vld [vmem:[%s1392_s5] ss:$0 sm:$0xff]  ;;  %s1220_s5 = smov [#allocation9]  }
  0x38   :  { %1006 = vmatpush3.bf16.msra.mxu0 %v1060_v6  ;;  %v1097_v37 = vpop.eup %1096  ;;  %1122 = vrcp.f32 %v381_v47  ;;  %1032 = vmatprep.subr.bf16.mxu1 %v1078_v56  ;;  %s863_s21 = sshll.u32 %s1220_s5, 4  ;;  %s864_s21 = int_to_ptr.vmem [resolvable:$true] %s863_s21 }
  0x39   :  { %1007 = vmatprep.subr.bf16.mxu0 %v1061_v7  ;;  %v1099_v42 = vpop.eup %1098  ;;  %448 = vperm.xlu0 %1054, %v1097_v37   ;;  %1124 = vrcp.f32 %v392_v57  ;;  %v1092_v57 = vld [vmem:[#allocation8 + $0x20] sm:$0xff]   ;;  %s1188_s22 = scalar_lea.vmem %s864_s21, 2048  ;;  %p1193_p2 = scmp.lt.s32.totalorder %s864_s21, %s864_s21 }
  0x3a   :  { %v1101_v43 = vpop.eup %1100  ;;  %458 = vperm.xlu1 %1055, %v1099_v42   ;;  %1126 = vrcp.f32 %v393_v59  ;;  %p1189_p1 = scmp.ne.s32.totalorder %s864_s21, %s1188_s22  ;;  %p1194_p3 = scmp.lt.s32.totalorder %s1188_s22, %s1188_s22 }
  0x3b   :  { %v1103_v44 = vpop.eup %1102  ;;  %1040 = vmatpush3.bf16.msra.mxu1 %v1079_v61 }
  0x3c   :  { %1008 = vmatpush3.bf16.msra.mxu0 %v1061_v7  ;;  %v1105_v52 = vpop.eup %1104  ;;  %1033 = vmatprep.subr.bf16.mxu1 %v1080_v62  ;;  %p1195_p4 = por %p1194_p3, %p1193_p2 }
  0x3d   :  { %1009 = vmatprep.subr.bf16.mxu0 %v1062_v21  ;;  %453 = vperm.xlu0 %1054, %v1101_v43   ;;  %v1107_v53 = vpop.eup %1106 }
  0x3e   :  { %463 = vperm.xlu1 %1055, %v1103_v44   ;;  %v1109_v58 = vpop.eup %1108  ;;  %p1196_p5 = pnand %p1195_p4, %p1189_p1 }
  0x3f   :  { %v1111_v60 = vpop.eup %1110  ;;  %1041 = vmatpush3.bf16.msra.mxu1 %v1081_v3 }
  0x40   :  { %1010 = vmatpush3.bf16.msra.mxu0 %v1062_v21  ;;  %v1113_v63 = vpop.eup %1112  ;;  %1034 = vmatprep.subr.bf16.mxu1 %v1082_v4 }
  0x41   :  { %1011 = vmatprep.subr.bf16.mxu0 %v1063_v25  ;;  %468 = vperm.xlu0 %1054, %v1105_v52   ;;  %v1115_v1 = vpop.eup %1114 }
  0x42   :  { %473 = vperm.xlu1 %1055, %v1107_v53   ;;  %v1117_v5 = vpop.eup %1116 }
  0x43   :  { %v1119_v6 = vpop.eup %1118  ;;  %1042 = vmatpush3.bf16.msra.mxu1 %v1083_v12 }
  0x44   :  { %1012 = vmatpush3.bf16.msra.mxu0 %v1063_v25  ;;  %v1121_v7 = vpop.eup %1120  ;;  %1035 = vmatprep.subr.bf16.mxu1 %v1084_v13 }
  0x45   :  { %933 = vmatprep.subr.bf16.mxu0 %v1072_v33  ;;  %478 = vperm.xlu0 %1054, %v1109_v58   ;;  %v1123_v9 = vpop.eup %1122 }
  0x46   :  { %483 = vperm.xlu1 %1055, %v1111_v60   ;;  %v1125_v10 = vpop.eup %1124 }
  0x47   :  { %1014 = vmatmul.mubr.bf16.vlgmr.msra.gmra.mxu0 %v1065_v31  ;;  %v1127_v11 = vpop.eup %1126  ;;  %1043 = vmatpush3.bf16.msra.mxu1 %v1085_v14 }
  0x48   :  { %1017 = vmatprep.mubr.bf16.mxu0 %v1066_v34  ;;  %934 = vmatpush3.bf16.msra.mxu0 %v1073_v40 }
  0x49   :  { %935 = vmatprep.subr.bf16.mxu0 %v1074_v41  ;;  %428 = vperm.xlu0 %1054, %v1113_v63   ;;  %v1093_v63 = vld [vmem:[#allocation8 + $0x28] sm:$0xff]  }
  0x4a   :  { %433 = vperm.xlu1 %1055, %v1115_v1   ;;  %1036 = vmatprep.subr.bf16.mxu1 %v1086_v15 }
  0x4b   :  { %1044 = vmatpush3.bf16.msra.mxu1 %v1087_v16 }
  0x4c   :  { %936 = vmatpush3.bf16.msra.mxu0 %v1075_v49 }
  0x4d   :  { %937 = vmatprep.subr.bf16.mxu0 %v1076_v50  ;;  %488 = vperm.xlu0 %1054, %v1117_v5   ;;  %v1091_v50 = vld [vmem:[#allocation8 + $0x18] sm:$0xff]   ;;  %v1094_v5 = vld [vmem:[#allocation8 + $0x30] sm:$0xff]  }
  0x4e   :  { %493 = vperm.xlu1 %1055, %v1119_v6  }
  0x4f   :  { %1018 = vmatmul.mubr.bf16.gmra.mxu0 %v1067_v45 }
  0x50   :  { %1021 = vmatprep.mubr.bf16.mxu0 %v1068_v51  ;;  %938 = vmatpush3.bf16.msra.mxu0 %v1077_v55 }
  0x51   :  { %939 = vmatprep.subr.bf16.mxu0 %v1078_v56  ;;  %438 = vperm.xlu0 %1054, %v1121_v7  }
  0x52   :  { %443 = vperm.xlu1 %1055, %v1123_v9  }
  0x54   :  { %940 = vmatpush3.bf16.msra.mxu0 %v1079_v61 }
  0x55   :  { %941 = vmatprep.subr.bf16.mxu0 %v1080_v62  ;;  %498 = vperm.xlu0 %1054, %v1125_v10   ;;  %v1095_v10 = vld [vmem:[#allocation8 + $0x38] sm:$0xff]  }
  0x56   :  { %503 = vperm.xlu1 %1055, %v1127_v11  }
  0x57   :  { %1022 = vmatmul.mubr.bf16.gmra.mxu0 %v1069_v0 }
  0x58   :  { %1025 = vmatprep.mubr.bf16.mxu0 %v1070_v2  ;;  %942 = vmatpush3.bf16.msra.mxu0 %v1081_v3 }
  0x59   :  { %943 = vmatprep.subr.bf16.mxu0 %v1082_v4 }
  0x5c   :  { %944 = vmatpush3.bf16.msra.mxu0 %v1083_v12 }
  0x5d   :  { %945 = vmatprep.subr.bf16.mxu0 %v1084_v13 }
  0x5f   :  { %1026 = vmatmul.mubr.bf16.gmra.mxu0 %v1071_v8 }
  0x60   :  { %946 = vmatpush3.bf16.msra.mxu0 %v1085_v14  ;;  %761 = vmatprep.mubr.bf16.mxu0 %v1088_v17 }
  0x61   :  { %947 = vmatprep.subr.bf16.mxu0 %v1086_v15 }
  0x64   :  { %948 = vmatpush3.bf16.msra.mxu0 %v1087_v16 }
  0xb4   :  { %v449_v20 = vpop.permute.xlu0 %448 }
  0xb5   :  { %v459_v19 = vpop.permute.xlu1 %458 }
  0xb8   :  { %v454_v22 = vpop.permute.xlu0 %453 }
  0xb9   :  { %v464_v21 = vpop.permute.xlu1 %463 }
  0xbc   :  { %v469_v24 = vpop.permute.xlu0 %468 }
  0xbd   :  { %v474_v23 = vpop.permute.xlu1 %473 }
  0xc0   :  { %v479_v26 = vpop.permute.xlu0 %478 }
  0xc1   :  { %v484_v25 = vpop.permute.xlu1 %483 }
  0xc4   :  { %v429_v28 = vpop.permute.xlu0 %428 }
  0xc5   :  { %v434_v27 = vpop.permute.xlu1 %433 }
  0xc8   :  { %v489_v33 = vpop.permute.xlu0 %488 }
  0xc9   :  { %v494_v31 = vpop.permute.xlu1 %493 }
  0xcc   :  { %v439_v42 = vpop.permute.xlu0 %438 }
  0xcd   :  { %v444_v40 = vpop.permute.xlu1 %443 }
  0xd0   :  { %v499_v14 = vpop.permute.xlu0 %498 }
  0xd1   :  { %v504_v12 = vpop.permute.xlu1 %503 }
 0x107   :  { %v1015_v29 = vpop.f32.mrf.mxu0 }
 0x108   :  { %v508_v46 = vmul.f32 %v1015_v29, %v439_v42 }
 0x109   :  { %v264_v30 = vpop.f32.mrf.mxu0 }
 0x10a   :  { %v506_v35 = vmul.f32 %v429_v28, %v264_v30 }
 0x10b   :  { %v1016_v32 = vpop.f32.mrf.mxu0 }
 0x10c   :  { %v509_v44 = vmul.f32 %v1016_v32, %v444_v40 }
 0x10d   :  { %v267_v34 = vpop.f32.mrf.mxu0 }
 0x10e   :  { %v507_v36 = vmul.f32 %v434_v27, %v267_v34  ;;  %v523_v51 = vpack.c.bf16 %v509_v44, %v508_v46 }
 0x10f   :  { %v1019_v37 = vpop.f32.mrf.mxu0 }
 0x110   :  { %v522_v39 = vpack.c.bf16 %v507_v36, %v506_v35  ;;  %v512_v56 = vmul.f32 %v1019_v37, %v459_v19 }
 0x111   :  { %v280_v41 = vpop.f32.mrf.mxu0 }
 0x112   :  { %762 = vmatmul.mubr.bf16.vlgmr.msra.gmra.mxu0 %v522_v39  ;;  %v510_v47 = vmul.f32 %v449_v20, %v280_v41 }
 0x113   :  { %v1020_v43 = vpop.f32.mrf.mxu0  ;;  %769 = vmatprep.mubr.bf16.mxu0 %v1090_v38 }
 0x114   :  { %v513_v54 = vmul.f32 %v1020_v43, %v464_v21 }
 0x115   :  { %v283_v45 = vpop.f32.mrf.mxu0 }
 0x116   :  { %v511_v48 = vmul.f32 %v454_v22, %v283_v45  ;;  %v525_v58 = vpack.c.bf16 %v513_v54, %v512_v56 }
 0x117   :  { %v1023_v49 = vpop.f32.mrf.mxu0 }
 0x118   :  { %v524_v52 = vpack.c.bf16 %v511_v48, %v510_v47  ;;  %v516_v4 = vmul.f32 %v1023_v49, %v479_v26 }
 0x119   :  { %v296_v53 = vpop.f32.mrf.mxu0 }
 0x11a   :  { %770 = vmatmul.mubr.bf16.gmra.mxu0 %v523_v51  ;;  %778 = vmatmul.mubr.bf16.vlgmr.msra.gmra.mxu1 %v524_v52  ;;  %v514_v62 = vmul.f32 %v469_v24, %v296_v53 }
 0x11b   :  { %785 = vmatprep.mubr.bf16.mxu1 %v1091_v50  ;;  %v1024_v55 = vpop.f32.mrf.mxu0 }
 0x11c   :  { %v517_v2 = vmul.f32 %v1024_v55, %v484_v25 }
 0x11d   :  { %v299_v59 = vpop.f32.mrf.mxu0 }
 0x11e   :  { %v515_v60 = vmul.f32 %v474_v23, %v299_v59  ;;  %v527_v6 = vpack.c.bf16 %v517_v2, %v516_v4 }
 0x11f   :  { %v1027_v61 = vpop.f32.mrf.mxu0 }
 0x120   :  { %v526_v0 = vpack.c.bf16 %v515_v60, %v514_v62  ;;  %v520_v15 = vmul.f32 %v1027_v61, %v499_v14 }
 0x121   :  { %v312_v1 = vpop.f32.mrf.mxu0 }
 0x122   :  { %786 = vmatmul.mubr.bf16.gmra.mxu1 %v525_v58  ;;  %v518_v9 = vmul.f32 %v489_v33, %v312_v1 }
 0x123   :  { %793 = vmatprep.mubr.bf16.mxu1 %v1092_v57  ;;  %v1028_v3 = vpop.f32.mrf.mxu0 }
 0x124   :  { %v521_v13 = vmul.f32 %v1028_v3, %v504_v12 }
 0x125   :  { %v315_v7 = vpop.f32.mrf.mxu0 }
 0x126   :  { %v519_v8 = vmul.f32 %v494_v31, %v315_v7  ;;  %v529_v16 = vpack.c.bf16 %v521_v13, %v520_v15 }
 0x128   :  { %v528_v11 = vpack.c.bf16 %v519_v8, %v518_v9 }
 0x12a   :  { %794 = vmatmul.mubr.bf16.gmra.mxu1 %v526_v0 }
 0x12b   :  { %801 = vmatprep.mubr.bf16.mxu1 %v1093_v63 }
 0x132   :  { %802 = vmatmul.mubr.bf16.gmra.mxu1 %v527_v6 }
 0x133   :  { %809 = vmatprep.mubr.bf16.mxu1 %v1094_v5 }
 0x13a   :  { %810 = vmatmul.mubr.bf16.gmra.mxu1 %v528_v11 }
 0x13b   :  { %817 = vmatprep.mubr.bf16.mxu1 %v1095_v10 }
 0x142   :  { %818 = vmatmul.mubr.bf16.gmra.mxu1 %v529_v16 }
 0x1d2   :  { %v949_v17 = vpop.f32.mrf.mxu0 }
 0x1d4   :  { %v950_v19 = vpop.f32.mrf.mxu0 }
 0x1d5   :  { %v951_v20 = vadd.f32 %v950_v19, %v949_v17 }
 0x1d6   :  { %v952_v21 = vpop.f32.mrf.mxu0 }
 0x1d7   :  { %v764_v22 = vadd.f32 %v951_v20, %v1366_v18 }
 0x1d8   :  { %v953_v23 = vpop.f32.mrf.mxu0 }
 0x1d9   :  { %v826_v24 = vmax.f32 %v764_v22, 0.0  ;;  %v954_v25 = vadd.f32 %v953_v23, %v952_v21 }
 0x1da   :  { %v955_v26 = vpop.f32.mrf.mxu0  ;;  %v961_v27 = vpop.f32.mrf.mxu1 }
 0x1db   :  { %842 = vst [vmem:[#allocation9] sm:$0xff] %v826_v24  ;;  %v767_v28 = vadd.f32 %v954_v25, %v1366_v18 }
 0x1dc   :  { %v956_v29 = vpop.f32.mrf.mxu0  ;;  %v962_v30 = vpop.f32.mrf.mxu1 }
 0x1dd   :  { %v827_v31 = vmax.f32 %v767_v28, 0.0  ;;  %v957_v32 = vadd.f32 %v956_v29, %v955_v26  ;;  %v963_v33 = vadd.f32 %v962_v30, %v961_v27 }
 0x1de   :  { %v958_v34 = vpop.f32.mrf.mxu0  ;;  %v964_v35 = vpop.f32.mrf.mxu1 }
 0x1df   :  { %843 = vst [vmem:[#allocation9 + $0x8] sm:$0xff] %v827_v31  ;;  %v772_v36 = vadd.f32 %v957_v32, %v1366_v18  ;;  %v780_v37 = vadd.f32 %v963_v33, %v1366_v18 }
 0x1e0   :  { %v959_v38 = vpop.f32.mrf.mxu0  ;;  %v965_v39 = vpop.f32.mrf.mxu1 }
 0x1e1   :  { %v828_v40 = vmax.f32 %v772_v36, 0.0  ;;  %v830_v41 = vmax.f32 %v780_v37, 0.0  ;;  %v960_v42 = vadd.f32 %v959_v38, %v958_v34  ;;  %v966_v43 = vadd.f32 %v965_v39, %v964_v35 }
 0x1e2   :  { %v967_v44 = vpop.f32.mrf.mxu1 }
 0x1e3   :  { %844 = vst [vmem:[#allocation9 + $0x10] sm:$0xff] %v828_v40  ;;  %846 = vst [vmem:[#allocation9 + $0x20] sm:$0xff] %v830_v41  ;;  %v775_v45 = vadd.f32 %v960_v42, %v1366_v18  ;;  %v783_v46 = vadd.f32 %v966_v43, %v1366_v18 }
 0x1e4   :  { %v968_v47 = vpop.f32.mrf.mxu1 }
 0x1e5   :  { %v829_v48 = vmax.f32 %v775_v45, 0.0  ;;  %v831_v49 = vmax.f32 %v783_v46, 0.0  ;;  %v969_v50 = vadd.f32 %v968_v47, %v967_v44 }
 0x1e6   :  { %v970_v51 = vpop.f32.mrf.mxu1 }
 0x1e7   :  { %845 = vst [vmem:[#allocation9 + $0x18] sm:$0xff] %v829_v48  ;;  %847 = vst [vmem:[#allocation9 + $0x28] sm:$0xff] %v831_v49  ;;  %v788_v52 = vadd.f32 %v969_v50, %v1366_v18 }
 0x1e8   :  { %v971_v53 = vpop.f32.mrf.mxu1 }
 0x1e9   :  { %v832_v54 = vmax.f32 %v788_v52, 0.0  ;;  %v972_v55 = vadd.f32 %v971_v53, %v970_v51 }
 0x1ea   :  { %v973_v56 = vpop.f32.mrf.mxu1 }
 0x1eb   :  { %848 = vst [vmem:[#allocation9 + $0x30] sm:$0xff] %v832_v54  ;;  %v791_v57 = vadd.f32 %v972_v55, %v1366_v18 }
 0x1ec   :  { %v974_v58 = vpop.f32.mrf.mxu1 }
 0x1ed   :  { %v833_v59 = vmax.f32 %v791_v57, 0.0  ;;  %v975_v60 = vadd.f32 %v974_v58, %v973_v56 }
 0x1ee   :  { %v976_v61 = vpop.f32.mrf.mxu1 }
 0x1ef   :  { %849 = vst [vmem:[#allocation9 + $0x38] sm:$0xff] %v833_v59  ;;  %v796_v62 = vadd.f32 %v975_v60, %v1366_v18 }
 0x1f0   :  { %v977_v63 = vpop.f32.mrf.mxu1 }
 0x1f1   :  { %v834_v0 = vmax.f32 %v796_v62, 0.0  ;;  %v978_v1 = vadd.f32 %v977_v63, %v976_v61 }
 0x1f2   :  { %v979_v2 = vpop.f32.mrf.mxu1 }
 0x1f3   :  { %850 = vst [vmem:[#allocation9 + $0x40] sm:$0xff] %v834_v0  ;;  %v799_v3 = vadd.f32 %v978_v1, %v1366_v18 }
 0x1f4   :  { %v980_v4 = vpop.f32.mrf.mxu1 }
 0x1f5   :  { %v835_v5 = vmax.f32 %v799_v3, 0.0  ;;  %v981_v6 = vadd.f32 %v980_v4, %v979_v2 }
 0x1f6   :  { %v982_v7 = vpop.f32.mrf.mxu1 }
 0x1f7   :  { %851 = vst [vmem:[#allocation9 + $0x48] sm:$0xff] %v835_v5  ;;  %v804_v8 = vadd.f32 %v981_v6, %v1366_v18 }
 0x1f8   :  { %v983_v9 = vpop.f32.mrf.mxu1 }
 0x1f9   :  { %v836_v10 = vmax.f32 %v804_v8, 0.0  ;;  %v984_v11 = vadd.f32 %v983_v9, %v982_v7 }
 0x1fa   :  { %v985_v12 = vpop.f32.mrf.mxu1 }
 0x1fb   :  { %852 = vst [vmem:[#allocation9 + $0x50] sm:$0xff] %v836_v10  ;;  %v807_v13 = vadd.f32 %v984_v11, %v1366_v18 }
 0x1fc   :  { %v986_v14 = vpop.f32.mrf.mxu1 }
 0x1fd   :  { %v837_v15 = vmax.f32 %v807_v13, 0.0  ;;  %v987_v16 = vadd.f32 %v986_v14, %v985_v12 }
 0x1fe   :  { %v988_v17 = vpop.f32.mrf.mxu1 }
 0x1ff   :  { %853 = vst [vmem:[#allocation9 + $0x58] sm:$0xff] %v837_v15  ;;  %v812_v19 = vadd.f32 %v987_v16, %v1366_v18 }
 0x200   :  { %v989_v20 = vpop.f32.mrf.mxu1 }
 0x201   :  { %v838_v21 = vmax.f32 %v812_v19, 0.0  ;;  %v990_v22 = vadd.f32 %v989_v20, %v988_v17 }
 0x202   :  { %v991_v23 = vpop.f32.mrf.mxu1 }
 0x203   :  { %854 = vst [vmem:[#allocation9 + $0x60] sm:$0xff] %v838_v21  ;;  %v815_v24 = vadd.f32 %v990_v22, %v1366_v18 }
 0x204   :  { %v992_v25 = vpop.f32.mrf.mxu1 }
 0x205   :  { %v839_v26 = vmax.f32 %v815_v24, 0.0  ;;  %v993_v27 = vadd.f32 %v992_v25, %v991_v23 }
 0x206   :  { %v994_v28 = vpop.f32.mrf.mxu1 }
 0x207   :  { %855 = vst [vmem:[#allocation9 + $0x68] sm:$0xff] %v839_v26  ;;  %v820_v29 = vadd.f32 %v993_v27, %v1366_v18 }
 0x208   :  { %v995_v30 = vpop.f32.mrf.mxu1 }
 0x209   :  { %v840_v31 = vmax.f32 %v820_v29, 0.0  ;;  %v996_v32 = vadd.f32 %v995_v30, %v994_v28 }
 0x20b   :  { %856 = vst [vmem:[#allocation9 + $0x70] sm:$0xff] %v840_v31  ;;  %v823_v33 = vadd.f32 %v996_v32, %v1366_v18 }
 0x20d   :  { %v841_v34 = vmax.f32 %v823_v33, 0.0 }
 0x20f   :  { %857 = vst [vmem:[#allocation9 + $0x78] sm:$0xff] %v841_v34 }
 0x210   :  { %1199 = shalt.err (!%p1196_p5)
}
 0x211   :  { %s1221_s23 = smov 128   ;;  %s1222_s24 = smov 8  }
 0x212   :  { %869 = dma.vmem_to_hbm [thread:$0]  %s864_s21, 2048, %s1393_s6, [#allocation5], %s1221_s23, %s1221_s23, %s1222_s24  }
 0x213   :  { %1212 = dma.done.wait [#allocation5], 2048  }
 0x214   :  { %1213 = vsyncadd [#allocation5], 4294965248 }
 0x215   :  { %873 = vsyncpa [#allocation4], 1 }
 0x216   :  { %874 = vsyncpa [#allocation7], 1 }
 0x217   :  { %875 = vsyncpa [#allocation5], 1 }

</bundles_post_ra>
